<compile_context>
chip_gen: v7x
topology: tpu7x:2x2x1
jax: 0.10.0
libtpu: 0.0.40
codegen_flags: <defaults>
</compile_context>

<pallas_src>
import jax
import jax.numpy as jnp
from jax.experimental import pallas as pl
from jax.experimental.pallas import tpu as pltpu


def _fanout_kernel(syn_ref, out_ref):
    # One grid step == one slab of AX_TILE target axons: broadcast the synapse
    # payload (already resident in VMEM) into every axon slot of this slab.
    out_ref[...] = jnp.broadcast_to(syn_ref[...][None, :, :], out_ref.shape)


def dendrite_forward(synapse: jax.Array, num_axons: int) -> jax.Array:
    """Fan the synapse payload out to `num_axons` response slots.

    Args:
      synapse: [B, D] payload array.
      num_axons: number of target axons.

    Returns:
      [num_axons, B, D] array — one (copied) response per axon.
    """
    B, D = synapse.shape
    itemsize = jnp.dtype(synapse.dtype).itemsize
    payload_bytes = B * D * itemsize

    # Pick AX_TILE so each output slab is ~1 MiB (capped at 2 MiB), which keeps
    # 2×in + 2×out double-buffers comfortably inside the scoped VMEM limit on
    # v5e / v6e / v7x while making the writeback DMA large and contiguous.
    target_block_bytes = 1 << 20
    ax_tile = max(1, target_block_bytes // max(payload_bytes, 1))
    ax_tile = min(ax_tile, num_axons)
    while ax_tile > 1 and ax_tile * payload_bytes > (2 << 20):
        ax_tile -= 1

    grid = (pl.cdiv(num_axons, ax_tile),)

    # Compute-free, bandwidth-only op: tell XLA so it can overlap neighbors.
    cost = pl.CostEstimate(
        flops=0,
        transcendentals=0,
        bytes_accessed=num_axons * payload_bytes + payload_bytes,
    )

    return pl.pallas_call(
        _fanout_kernel,
        out_shape=jax.ShapeDtypeStruct((num_axons, B, D), synapse.dtype),
        grid_spec=pltpu.PrefetchScalarGridSpec(
            num_scalar_prefetch=0,
            grid=grid,
            # Input block is the full payload (last two dims == full array
            # dims, so the (8,128) divisibility rule is satisfied for any B,D).
            in_specs=[pl.BlockSpec((B, D), lambda i: (0, 0))],
            # Output block is a slab of AX_TILE axons; Pallas masks the
            # writeback of the tail block when num_axons % ax_tile != 0.
            out_specs=pl.BlockSpec((ax_tile, B, D), lambda i: (i, 0, 0)),
        ),
        compiler_params=pltpu.CompilerParams(
            # "parallel" lets v7x shard axon chunks across its 2 TensorCores;
            # near-neutral (free) on single-TC v5e / v6e.
            dimension_semantics=("parallel",),
            # Explicit, conservative scoped-VMEM limit valid on all three
            # generations (well under v7x's 64 MiB physical VMEM).
            vmem_limit_bytes=32 * 1024 * 1024,
        ),
        cost_estimate=cost,
    )(synapse)


if __name__ == "__main__":
    key = jax.random.PRNGKey(0)
    B, D = 8, 128          # (8, 128) vreg-aligned, lane-dense payload tile
    NUM_AXONS = 4

    synapse_payload = jax.random.normal(key, (B, D), dtype=jnp.float32)

    responses = dendrite_forward(synapse_payload, NUM_AXONS)
    responses = jax.block_until_ready(responses)

    # Semantics check: every axon received an identical copy of the synapse.
    expected = jnp.broadcast_to(synapse_payload[None], (NUM_AXONS, B, D))
    assert responses.shape == (NUM_AXONS, B, D)
    assert bool(jnp.array_equal(responses, expected))

    print("KERNEL_OK")
</pallas_src>

<mosaic_0001>
module attributes {stable_mosaic.version = 11 : i64} {
  func.func @_fanout_kernel(%arg0: i32, %arg1: memref<8x128xf32, #tpu.memory_space<vmem>>, %arg2: memref<4x8x128xf32, #tpu.memory_space<vmem>>) attributes {dimension_semantics = [#tpu.dimension_semantics<parallel>], iteration_bounds = array<i64: 1>, scalar_prefetch = 0 : i64, scratch_operands = 0 : i64, tpu.core_type = #tpu.core_type<tc>, window_params = [{pipeline_mode = #tpu.pipeline_mode<synchronous>, transform_indices = @transform_0, window_bounds = array<i64: 8, 128>}, {transform_indices = @transform_1, window_bounds = array<i64: 4, 8, 128>}]} {
    %c0 = arith.constant 0 : index
    %c0_0 = arith.constant 0 : index
    %0 = vector.load %arg1[%c0, %c0_0] : memref<8x128xf32, #tpu.memory_space<vmem>>, vector<8x128xf32>
    %1 = vector.shape_cast %0 : vector<8x128xf32> to vector<1x8x128xf32>
    %2 = vector.shape_cast %1 : vector<1x8x128xf32> to vector<1x8x128xf32>
    %3 = vector.broadcast %2 : vector<1x8x128xf32> to vector<4x8x128xf32>
    %c0_1 = arith.constant 0 : index
    %c0_2 = arith.constant 0 : index
    %c0_3 = arith.constant 0 : index
    %4 = vector.load %arg2[%c0_1, %c0_2, %c0_3] : memref<4x8x128xf32, #tpu.memory_space<vmem>>, vector<4x8x128xf32>
    tpu.vector_store %arg2[%c0_1, %c0_2, %c0_3], %3 {strides = array<i32>} : memref<4x8x128xf32, #tpu.memory_space<vmem>>, vector<4x8x128xf32>,
    return
  }
  func.func @transform_0(%arg0: i32) -> (i32, i32) {
    %c0_i32 = arith.constant 0 : i32
    %c0_i32_0 = arith.constant 0 : i32
    %c0_i32_1 = arith.constant 0 : i32
    return %c0_i32, %c0_i32_0 : i32, i32
  }
  func.func @transform_1(%arg0: i32) -> (i32, i32, i32) {
    %c0_i32 = arith.constant 0 : i32
    %c0_i32_0 = arith.constant 0 : i32
    %c0_i32_1 = arith.constant 0 : i32
    return %arg0, %c0_i32, %c0_i32_0 : i32, i32, i32
  }
}

</mosaic_0001>

<bundles_post_ra>
// kernel: tpu_custom_call.1
= control target key start
LH: loop header
LB: loop body
LE: loop exit
PB: predicated region body
PF: predicated region fallthrough
CT: control target
= control target key end

     0   :  { %6 = vsyncpa [#allocation3], 0  ;;  %s133_s0 = inlined_call_operand.hbm [shape: f32[8,128], index: 0, kind: input, shape index: {}]   ;;  %s134_s1 = inlined_call_operand.hbm [shape: f32[4,8,128], index: 1, kind: output, shape index: {}]  }
   0x1   :  { %7 = vsyncpa [#allocation4], 0  ;;  %s95_s6 = smov [#allocation2]   ;;  %s47_s10 = scalar_lea.hbm %s133_s0, 128 }
   0x2   :  { %s14_s7 = sshll.u32 %s95_s6, 4  ;;  %p48_p0 = scmp.ne.s32.totalorder %s133_s0, %s47_s10  ;;  %s15_s7 = int_to_ptr.vmem [resolvable:$true] %s14_s7 }
   0x3   :  { %p51_p1 = scmp.lt.u32.totalorder %s47_s10, %s133_s0 }
   0x5   :  { %p53_p2 = pnand %p51_p1, %p48_p0 }
   0x7   :  { %56 = shalt.err (!%p53_p2)
}
   0x8   :  { %s57_s15 = scalar_lea.vmem %s15_s7, 128  ;;  %p62_p4 = scmp.lt.s32.totalorder %s15_s7, %s15_s7 }
   0x9   :  { %p58_p3 = scmp.ne.s32.totalorder %s15_s7, %s57_s15  ;;  %p63_p5 = scmp.lt.s32.totalorder %s57_s15, %s57_s15 }
   0xb   :  { %p64_p6 = por %p63_p5, %p62_p4 }
   0xd   :  { %p65_p7 = pnand %p64_p6, %p58_p3 }
   0xf   :  { %68 = shalt.err (!%p65_p7)
}
  0x10   :  { %17 = dma.hbm_to_vmem [thread:$0]  %s133_s0, 128, %s15_s7, [#allocation3]  }
  0x11   :  { %91 = dma.done.wait [#allocation3], 128  }
  0x12   :  { %92 = vsyncadd [#allocation3], 4294967168  ;;  %s96_s18 = smov [#allocation5]   ;;  %v21_v0 = vld [vmem:[#allocation2] sm:$0xff] }
  0x13   :  { %s31_s19 = sshll.u32 %s96_s18, 4  ;;  %22 = vst [vmem:[#allocation5] sm:$0xff] %v21_v0  ;;  %23 = vst [vmem:[#allocation5 + $0x8] sm:$0xff] %v21_v0  ;;  %s32_s19 = int_to_ptr.vmem [resolvable:$true] %s31_s19 }
  0x14   :  { %24 = vst [vmem:[#allocation5 + $0x10] sm:$0xff] %v21_v0  ;;  %25 = vst [vmem:[#allocation5 + $0x18] sm:$0xff] %v21_v0  ;;  %s69_s20 = scalar_lea.vmem %s32_s19, 512  ;;  %p74_p9 = scmp.lt.s32.totalorder %s32_s19, %s32_s19 }
  0x15   :  { %p70_p8 = scmp.ne.s32.totalorder %s32_s19, %s69_s20  ;;  %p75_p10 = scmp.lt.s32.totalorder %s69_s20, %s69_s20 }
  0x17   :  { %p76_p11 = por %p75_p10, %p74_p9 }
  0x19   :  { %p77_p12 = pnand %p76_p11, %p70_p8 }
  0x1b   :  { %80 = shalt.err (!%p77_p12)
}
  0x1c   :  { %s81_s0 = scalar_lea.hbm %s134_s1, 512 }
  0x1d   :  { %p82_p13 = scmp.ne.s32.totalorder %s134_s1, %s81_s0  ;;  %p85_p0 = scmp.lt.u32.totalorder %s81_s0, %s134_s1 }
  0x1f   :  { %p87_p1 = pnand %p85_p0, %p82_p13 }
  0x21   :  { %90 = shalt.err (!%p87_p1)
}
  0x22   :  { %s97_s27 = smov 128   ;;  %s98_s28 = smov 8  }
  0x23   :  { %37 = dma.vmem_to_hbm [thread:$0]  %s32_s19, 512, %s134_s1, [#allocation4], %s97_s27, %s97_s27, %s98_s28  }
  0x24   :  { %93 = dma.done.wait [#allocation4], 512  }
  0x25   :  { %94 = vsyncadd [#allocation4], 4294966784 }
  0x26   :  { %41 = vsyncpa [#allocation3], 1 }
  0x27   :  { %42 = vsyncpa [#allocation4], 1 }

</bundles_post_ra>
